<compile_context>
chip_gen: v6e
topology: v6e:2x2x1
jax: 0.10.0
libtpu: 0.0.40
codegen_flags: <defaults>
</compile_context>

<pallas_src>
import functools

import jax
import jax.numpy as jnp
import numpy as np
from jax import lax
from jax.experimental import pallas as pl
from jax.experimental.pallas import tpu as pltpu


def _round_up(x, m):
    return ((x + m - 1) // m) * m


# ---------------------------------------------------------------------------
# Kernel 1: once-per-sequence encoder projection   s_proj = src @ Wsrc + b
# ---------------------------------------------------------------------------
def source_proj_kernel(src_ref, wsrc_ref, bc_ref, out_ref):
    # src_ref : (TM, HsP) f32, wsrc_ref : (HsP, HP) f32, bc_ref : (1, HP) f32
    # out_ref : (TM, HP) bf16
    acc = jnp.dot(src_ref[...], wsrc_ref[...], preferred_element_type=jnp.float32)
    out_ref[...] = (acc + bc_ref[...]).astype(out_ref.dtype)


# ---------------------------------------------------------------------------
# Kernel 2: per-decoder-step attention (one batch tile per grid step)
# ---------------------------------------------------------------------------
def att_step_kernel(tgt_ref, sproj_ref, src_ref, wt_ref, ws_ref, ct_ref, ns_ref,
                    *, seq_len):
    # tgt_ref   : (Bb, HtP)  f32   current decoder hidden state (padded)
    # sproj_ref : (Bb, SP, HP) bf16 precomputed source projection (bias included)
    # src_ref   : (Bb, SP, HsP) bf16 encoder states, B-major
    # wt_ref    : (HtP, HP) f32    target half of ff_concat weight (pre-transposed)
    # ws_ref    : (1, HP)   f32    ff_score weight
    # ct_ref    : (Bb, HsP) f32    context vector (lane-dense)
    # ns_ref    : (Bb, SP)  f32    attention weights (lane-dense, softmax over S)
    Bb, SP, _ = sproj_ref.shape

    t_proj = jnp.dot(tgt_ref[...], wt_ref[...],
                     preferred_element_type=jnp.float32)               # (Bb, HP) f32

    # upcast bf16 sproj to f32 before tanh (v5e has no bf16 VPU/EUP)
    hidden = jnp.tanh(sproj_ref[...].astype(jnp.float32)
                      + t_proj[:, None, :])                            # (Bb, SP, HP)

    # ff_score: reduce over H (no bias); padded H columns of ws are zero
    scores = jnp.sum(hidden * ws_ref[...][None, :, :], axis=-1)        # (Bb, SP)

    # mask padded sequence positions, stabilized softmax over the (lane) seq axis
    pos = lax.broadcasted_iota(jnp.int32, (Bb, SP), 1)
    scores = jnp.where(pos < seq_len, scores, -jnp.inf)
    m = jnp.max(scores, axis=-1, keepdims=True)
    e = jnp.exp(scores - m)
    norm = e / jnp.sum(e, axis=-1, keepdims=True)                      # (Bb, SP)
    ns_ref[...] = norm

    # context: ct[b,:] = sum_s norm[b,s] * src[b,s,:]  -> batched MXU matmul,
    # weights cast to the (bf16) storage dtype, f32 accumulation.
    ct3 = jnp.einsum("bqs,bsh->bqh",
                     norm[:, None, :].astype(src_ref.dtype), src_ref[...],
                     preferred_element_type=jnp.float32)               # (Bb, 1, HsP)
    ct_ref[...] = ct3[:, 0, :]                                         # (Bb, HsP)


# ---------------------------------------------------------------------------
# Wrappers
# ---------------------------------------------------------------------------
def prepare_params(w_concat, b_concat, w_score, hidden_dim_t, hidden_dim_s):
    """One-time parameter prep: cast, split, transpose and pad to lane multiples."""
    w = jnp.asarray(w_concat, jnp.float32)                 # (H, Ht+Hs)
    H = w.shape[0]
    Ht, Hs = hidden_dim_t, hidden_dim_s
    HP, HtP, HsP = _round_up(H, 128), _round_up(Ht, 128), _round_up(Hs, 128)

    wt = jnp.pad(w[:, :Ht].T, ((0, HtP - Ht), (0, HP - H)))           # (HtP, HP)
    wsrc = jnp.pad(w[:, Ht:].T, ((0, HsP - Hs), (0, HP - H)))         # (HsP, HP)
    bc = jnp.pad(jnp.asarray(b_concat, jnp.float32).reshape(1, H),
                 ((0, 0), (0, HP - H)))                               # (1, HP)
    ws = jnp.pad(jnp.asarray(w_score, jnp.float32).reshape(1, H),
                 ((0, 0), (0, HP - H)))                               # (1, HP)
    return {"wt": wt, "wsrc": wsrc, "bc": bc, "ws": ws,
            "dims": (H, Ht, Hs, HP, HtP, HsP)}


def precompute_source(source_hs, params, *, tile_m=512):
    """Once per sequence: B-major padded layout + bf16 source projection."""
    S, B, Hs = source_hs.shape
    H, Ht, _, HP, HtP, HsP = params["dims"]
    SP, BP = _round_up(S, 128), _round_up(B, 8)

    src = jnp.transpose(source_hs.astype(jnp.float32), (1, 0, 2))      # (B, S, Hs)
    src = jnp.pad(src, ((0, BP - B), (0, SP - S), (0, HsP - Hs)))      # (BP, SP, HsP)
    src_flat = src.reshape(BP * SP, HsP)                               # XLA plumbing

    rows = BP * SP                                   # multiple of 1024 (8 * 128)
    tm = min(tile_m, rows)                           # 512 divides rows
    grid = (rows // tm,)

    cost = pl.CostEstimate(
        flops=2 * rows * HsP * HP,
        transcendentals=0,
        bytes_accessed=4 * (rows * HsP + HsP * HP + HP) + 2 * rows * HP,
    )
    sproj_flat = pl.pallas_call(
        source_proj_kernel,
        out_shape=jax.ShapeDtypeStruct((rows, HP), jnp.bfloat16),
        grid=grid,
        in_specs=[
            pl.BlockSpec((tm, HsP), lambda i: (i, 0)),       # streamed rows
            pl.BlockSpec((HsP, HP), lambda i: (0, 0)),       # weight stays resident
            pl.BlockSpec((1, HP), lambda i: (0, 0)),         # bias stays resident
        ],
        out_specs=pl.BlockSpec((tm, HP), lambda i: (i, 0)),
        compiler_params=pltpu.CompilerParams(
            dimension_semantics=("parallel",),
            vmem_limit_bytes=32 * 1024 * 1024),
        cost_estimate=cost,
    )(src_flat, params["wsrc"], params["bc"])

    sproj = sproj_flat.reshape(BP, SP, HP)                   # bf16
    src_bf16 = src.astype(jnp.bfloat16)                      # bf16 storage
    return src_bf16, sproj, (S, B, SP, BP)


def _pick_b_block(BP, SP, HP, HsP, budget_bytes=4 << 20):
    """Largest multiple-of-8 batch block whose bf16 inputs fit the VMEM budget."""
    per_row = SP * (HP + HsP) * 2
    bb = max(8, (budget_bytes // max(per_row, 1)) // 8 * 8)
    bb = min(bb, BP)
    while BP % bb != 0:
        bb -= 8
    return max(bb, 8)


def attention_step(target_h, src_bf16, sproj, meta, params):
    """Per decoder step. Returns lane-dense (B, Hs) ct and (B, S) attention weights."""
    S, B, SP, BP = meta
    H, Ht, Hs, HP, HtP, HsP = params["dims"]

    tgt = target_h.astype(jnp.float32).reshape(B, Ht)
    tgt = jnp.pad(tgt, ((0, BP - B), (0, HtP - Ht)))                   # (BP, HtP)

    Bb = _pick_b_block(BP, SP, HP, HsP)
    grid = (BP // Bb,)
    kernel = functools.partial(att_step_kernel, seq_len=S)

    cost = pl.CostEstimate(
        flops=2 * BP * HtP * HP + 3 * BP * SP * HP + 2 * BP * SP * HsP + 6 * BP * SP,
        transcendentals=BP * SP * HP + BP * SP,
        bytes_accessed=(4 * (BP * HtP + HtP * HP + HP + BP * HsP + BP * SP)
                        + 2 * (BP * SP * HP + BP * SP * HsP)),
    )
    ct_p, ns_p = pl.pallas_call(
        kernel,
        out_shape=(jax.ShapeDtypeStruct((BP, HsP), jnp.float32),
                   jax.ShapeDtypeStruct((BP, SP), jnp.float32)),
        grid=grid,
        in_specs=[
            pl.BlockSpec((Bb, HtP), lambda i: (i, 0)),
            pl.BlockSpec((Bb, SP, HP), lambda i: (i, 0, 0)),
            pl.BlockSpec((Bb, SP, HsP), lambda i: (i, 0, 0)),
            pl.BlockSpec((HtP, HP), lambda i: (0, 0)),
            pl.BlockSpec((1, HP), lambda i: (0, 0)),
        ],
        out_specs=(pl.BlockSpec((Bb, HsP), lambda i: (i, 0)),
                   pl.BlockSpec((Bb, SP), lambda i: (i, 0))),
        compiler_params=pltpu.CompilerParams(
            dimension_semantics=("parallel",),
            vmem_limit_bytes=32 * 1024 * 1024),
        cost_estimate=cost,
    )(tgt, sproj, src_bf16, params["wt"], params["ws"])

    # strip padding; keep B-major layout (callers stack steps and transpose once)
    return ct_p[:B, :Hs], ns_p[:B, :S]


def seq2seq_att_forward(target_h, source_hs, w_concat, b_concat, w_score):
    """Full forward matching the PyTorch module (params in PyTorch layout)."""
    S, B, Hs = source_hs.shape
    Ht = target_h.shape[-1]
    params = prepare_params(w_concat, b_concat, w_score, Ht, Hs)
    src_bf16, sproj, meta = precompute_source(source_hs, params)
    ct_b, ns_b = attention_step(target_h, src_bf16, sproj, meta, params)
    # single layout conversion to the module's outputs: ct (1,B,Hs), norm (S,B)
    return ct_b[None, :, :], ns_b.T


# ---------------------------------------------------------------------------
# Pure-JAX reference (mirrors the PyTorch forward exactly)
# ---------------------------------------------------------------------------
def ref_forward(target_h, source_hs, w_concat, b_concat, w_score):
    S = source_hs.shape[0]
    tgt_rep = jnp.tile(target_h, (S, 1, 1))
    concat = jnp.concatenate([tgt_rep, source_hs], axis=2)
    h = jnp.tanh(concat @ w_concat.T + b_concat)
    scores = (h @ w_score.T)[..., 0]
    norm = jax.nn.softmax(scores, axis=0)
    ct = jnp.sum(norm[:, :, None] * source_hs, axis=0, keepdims=True)
    return ct, norm


if __name__ == "__main__":
    # small shapes consistent with the module
    S, B = 8, 2                 # source seq length, batch
    Hs, Ht, H = 32, 32, 32      # hidden_dim_s, hidden_dim_t, hidden_dim

    key = jax.random.PRNGKey(0)
    k1, k2, k3, k4, k5 = jax.random.split(key, 5)

    target_h = jax.random.normal(k1, (1, B, Ht), jnp.float32)
    source_hs = jax.random.normal(k2, (S, B, Hs), jnp.float32)

    # synthetic parameters in nn.Linear layout
    w_concat = 0.1 * jax.random.normal(k3, (H, Ht + Hs), jnp.float32)  # ff_concat.weight
    b_concat = 0.1 * jax.random.normal(k4, (H,), jnp.float32)          # ff_concat.bias
    w_score = 0.1 * jax.random.normal(k5, (1, H), jnp.float32)         # ff_score.weight

    ct, norm_scores = seq2seq_att_forward(target_h, source_hs,
                                          w_concat, b_concat, w_score)
    jax.block_until_ready((ct, norm_scores))

    ct_ref, ns_ref = ref_forward(target_h, source_hs, w_concat, b_concat, w_score)
    assert ct.shape == (1, B, Hs) and norm_scores.shape == (S, B)
    # bf16 storage of sproj/src -> looser tolerances than the pure-f32 version
    np.testing.assert_allclose(np.asarray(ct), np.asarray(ct_ref),
                               atol=2e-2, rtol=2e-2)
    np.testing.assert_allclose(np.asarray(norm_scores), np.asarray(ns_ref),
                               atol=2e-2, rtol=2e-2)
    print("KERNEL_OK")
</pallas_src>

<mosaic_0001>
module attributes {stable_mosaic.version = 11 : i64} {
  func.func @source_proj_kernel(%arg0: i32, %arg1: memref<512x128xf32, #tpu.memory_space<vmem>>, %arg2: memref<128x128xf32, #tpu.memory_space<vmem>>, %arg3: memref<1x128xf32, #tpu.memory_space<vmem>>, %arg4: memref<512x128xbf16, #tpu.memory_space<vmem>>) attributes {dimension_semantics = [#tpu.dimension_semantics<parallel>], iteration_bounds = array<i64: 2>, scalar_prefetch = 0 : i64, scratch_operands = 0 : i64, tpu.core_type = #tpu.core_type<tc>, window_params = [{transform_indices = @transform_0, window_bounds = array<i64: 512, 128>}, {pipeline_mode = #tpu.pipeline_mode<synchronous>, transform_indices = @transform_1, window_bounds = array<i64: 128, 128>}, {pipeline_mode = #tpu.pipeline_mode<synchronous>, transform_indices = @transform_2, window_bounds = array<i64: 1, 128>}, {transform_indices = @transform_3, window_bounds = array<i64: 512, 128>}]} {
    %c0 = arith.constant 0 : index
    %c0_0 = arith.constant 0 : index
    %0 = vector.load %arg1[%c0, %c0_0] : memref<512x128xf32, #tpu.memory_space<vmem>>, vector<512x128xf32>
    %c0_1 = arith.constant 0 : index
    %c0_2 = arith.constant 0 : index
    %1 = vector.load %arg2[%c0_1, %c0_2] : memref<128x128xf32, #tpu.memory_space<vmem>>, vector<128x128xf32>
    %cst = arith.constant dense<0.000000e+00> : vector<512x128xf32>
    %2 = tpu.matmul %0, %1, %cst {dimension_numbers = #tpu.dot_dimension_numbers<[1], [0], [0], [1], [0, 0, 1, 1], [], []>} : vector<512x128xf32>, vector<128x128xf32>, vector<512x128xf32> -> vector<512x128xf32>
    %c0_3 = arith.constant 0 : index
    %c0_4 = arith.constant 0 : index
    %3 = vector.load %arg3[%c0_3, %c0_4] : memref<1x128xf32, #tpu.memory_space<vmem>>, vector<1x128xf32>
    %4 = vector.broadcast %3 : vector<1x128xf32> to vector<512x128xf32>
    %5 = arith.addf %2, %4 : vector<512x128xf32>
    %6 = arith.truncf %5 : vector<512x128xf32> to vector<512x128xbf16>
    %c0_5 = arith.constant 0 : index
    %c0_6 = arith.constant 0 : index
    %7 = vector.load %arg4[%c0_5, %c0_6] : memref<512x128xbf16, #tpu.memory_space<vmem>>, vector<512x128xbf16>
    tpu.vector_store %arg4[%c0_5, %c0_6], %6 {strides = array<i32>} : memref<512x128xbf16, #tpu.memory_space<vmem>>, vector<512x128xbf16>,
    return
  }
  func.func @transform_0(%arg0: i32) -> (i32, i32) {
    %c0_i32 = arith.constant 0 : i32
    %c0_i32_0 = arith.constant 0 : i32
    return %arg0, %c0_i32 : i32, i32
  }
  func.func @transform_1(%arg0: i32) -> (i32, i32) {
    %c0_i32 = arith.constant 0 : i32
    %c0_i32_0 = arith.constant 0 : i32
    %c0_i32_1 = arith.constant 0 : i32
    return %c0_i32, %c0_i32_0 : i32, i32
  }
  func.func @transform_2(%arg0: i32) -> (i32, i32) {
    %c0_i32 = arith.constant 0 : i32
    %c0_i32_0 = arith.constant 0 : i32
    %c0_i32_1 = arith.constant 0 : i32
    return %c0_i32, %c0_i32_0 : i32, i32
  }
  func.func @transform_3(%arg0: i32) -> (i32, i32) {
    %c0_i32 = arith.constant 0 : i32
    %c0_i32_0 = arith.constant 0 : i32
    return %arg0, %c0_i32 : i32, i32
  }
}

</mosaic_0001>

<bundles_post_ra>
// kernel: tpu_custom_call.1
= control target key start
LH: loop header
LB: loop body
LE: loop exit
PB: predicated region body
PF: predicated region fallthrough
CT: control target
= control target key end

     0   :  { %8 = vsyncpa [#allocation3], 0  ;;  %s2239_s0 = inlined_call_operand.hbm [shape: f32[1024,128], index: 0, kind: input, shape index: {}]   ;;  %s2240_s1 = inlined_call_operand.hbm [shape: f32[128,128], index: 1, kind: input, shape index: {}]   ;;  %s2241_s2 = inlined_call_operand.vmem [shape: f32[1,128], index: 2, kind: input, shape index: {}]   ;;  %s2242_s3 = inlined_call_operand.hbm [shape: bf16[1024,128], index: 3, kind: output, shape index: {}]  }
   0x1   :  { %10 = vsyncpa [#allocation3 + $0x1], 0 }
   0x2   :  { %11 = vsyncpa [#allocation6], 0 }
   0x3   :  { %12 = vsyncpa [#allocation4], 0 }
   0x4   :  { %14 = vsyncpa [#allocation4 + $0x1], 0  ;;  %s1885_s12 = smov 0   ;;  %s1887_s13 = smov 0  }
   0x5   :  { %s1889_s14 = smov 0   ;;  %s1891_s15 = smov 0  }
   0x6 LB: > { %s1906_s16 = sadd.s32 4294967295, %s1856_s15   ;;  %s1095_s17 = sadd.s32 4294967294, %s1856_s15   ;;  %s1856_s15 = sphi %s1891_s15, %s2264_s15   ;;  %s1852_s14 = sphi %s1889_s14, %s2263_s14   ;;  %s1848_s13 = sphi %s1887_s13, %s2262_s13   ;;  %s1844_s12 = sphi %s1885_s12, %s2261_s12  }
   0x7   : > { %p40_p0 = scmp.ne.s32.totalorder %s1848_s13, %s1844_s12  ;;  %p2243_p1 = scmp.eq.s32.totalorder %s1906_s16, 0 }
   0x8   : > { %p112_p3 = scmp.eq.s32.totalorder %s1095_s17, 1  ;;  %p1096_p5 = scmp.ge.s32.totalorder %s1856_s15, 1 }
   0x9   : > { %p1915_p4 = por %p2243_p1, %p40_p0  ;;  %p119_p7 = scmp.lt.s32.totalorder %s1856_s15, 3 }
   0xa   : > { %p1920_p6 = por %p112_p3, %p40_p0  ;;  %s1858_s21 = smov [#allocation5]  }
   0xb   : > { %s2247_s18 = scalar_select %p1915_p4, 1, 0 }
   0xc   : > { %s2248_s19 = scalar_select %p1920_p6, 1, 0 }
   0xd   : > { %p1925_p8 = pnand %p1096_p5, %p119_p7  ;;  %s131_s22 = sshll.u32 %s1858_s21, 4  ;;  %s132_s22 = int_to_ptr.vmem [resolvable:$true] %s131_s22 }
   0xe   : > { %s1939_s24 = sadd.s32 1, %s1856_s15   ;;  %s27_s25 = sadd.s32 1, %s1852_s14 }
   0xf   : > { %s2249_s20 = scalar_select %p1925_p8, 1, 0 }
  0x10   : > { %p1681_p9 = pneg %p1925_p8  ;;  %s24_s26 = ssub.s32 %s1856_s15, %s1939_s24 }
  0x11   : > { %s1745_s27 = scalar_lea.vmem %s132_s22, 2048  ;;  %p1753_p5 = scmp.lt.s32.totalorder %s132_s22, %s132_s22 }
  0x12   : > { %p1934_p11 = pnand %p1681_p9, %p2243_p1  ;;  %p1746_p13 = scmp.ne.s32.totalorder %s132_s22, %s1745_s27 }
  0x13   : > { %p1754_p7 = scmp.lt.s32.totalorder %s1745_s27, %s1745_s27 }
  0x14   : > { %p1736_p12 = pneg %p1934_p11 }
  0x15   : > { %p1755_p10 = por %p1754_p7, %p1753_p5 }
  0x16   : > { %p1748_p0 = pnand %p1746_p13, %p1736_p12 }
  0x18   : > { %p1749_p3 = pneg %p1748_p0 }
  0x1a   : > { %p1756_p2 = pnand %p1755_p10, %p1749_p3 }
  0x1c   : > { %1759 = shalt.err (!%p1756_p2)
}
  0x1d   : > { %s1859_s28 = smov 128   ;;  %s1860_s29 = smov 8  }
  0x1e   : > { %1684 = dma.hbm_to_vmem [thread:$0]  (!%p1934_p11), %s2240_s1, 2048, %s132_s22, [#allocation6], %s1859_s28, %s1859_s28, %s1860_s29  }
  0x1f   : > { %p25_p2 = scmp.eq.s32.totalorder %s24_s26, 0  ;;  %p34_p9 = scmp.ne.s32.totalorder %s1852_s14, %s1848_s13 }
  0x20   : > { %p35_p10 = scmp.eq.s32.totalorder %s1856_s15, 0  ;;  %p1694_p12 = scmp.lt.s32.totalorder %s1856_s15, 2 }
  0x21   : > { %s1959_s5 = scalar_select %p25_p2, %s1852_s14, %s27_s25  }
  0x22   : > { %p36_p13 = por %p35_p10, %p34_p9  ;;  %p2251_p0 = scmp.eq.s32.totalorder %s1906_s16, 1 }
  0x23   : > { %s148_s7 = sand.u32 1, %s1852_s14   ;;  %s1176_s8 = sshll.u32 %s1856_s15, 13 }
  0x24   : > { %p1963_p3 = por %p2251_p0, %p34_p9  ;;  %s1099_s9 = sshll.u32 %s148_s7, 9 }
  0x25   : > { %s1972_s17 = scalar_lea.hbm %s2239_s0, %s1176_s8  ;;  %s152_s21 = scalar_lea.vmem [#allocation2], %s1099_s9 }
  0x26   : > { %s2252_s6 = scalar_select %p1963_p3, 1, 0 }
  0x27   : > { %s159_s22 = sshll.u32 %s152_s21, 4  ;;  %p1974_p11 = pnand %p1694_p12, %p36_p13  ;;  %s1978_s22 = int_to_ptr.vmem [resolvable:$true] %s159_s22 }
  0x28   : > { %s1980_s25 = scalar_lea.sflag [#allocation3], %s148_s7  ;;  %s1760_s26 = scalar_lea.hbm %s1972_s17, 8192 }
  0x29   : > { %p1761_p5 = scmp.ne.s32.totalorder %s1972_s17, %s1760_s26  ;;  %p1762_p7 = pneg %p1974_p11 }
  0x2a   : > { %s1765_s4 = scalar_lea.hbm %s2239_s0, 16384  ;;  %p1766_p10 = scmp.lt.s32.totalorder %s1972_s17, %s2239_s0 }
  0x2b   : > { %p1763_p2 = pnand %p1762_p7, %p1761_p5  ;;  %p1767_p12 = scmp.lt.s32.totalorder %s1765_s4, %s1760_s26 }
  0x2d   : > { %p1764_p9 = pneg %p1763_p2  ;;  %p1768_p13 = por %p1767_p12, %p1766_p10 }
  0x2f   : > { %p1769_p0 = pnand %p1768_p13, %p1764_p9 }
  0x31   : > { %1772 = shalt.err (!%p1769_p0)
}
  0x32   : > { %s1773_s7 = scalar_lea.vmem %s1978_s22, 8192  ;;  %s1861_s10 = smov [#allocation2]  }
  0x33   : > { %p1774_p1 = scmp.ne.s32.totalorder %s1978_s22, %s1773_s7  ;;  %s1778_s11 = sshll.u32 %s1861_s10, 4  ;;  %s1779_s11 = int_to_ptr.vmem [resolvable:$false] %s1778_s11 }
  0x34   : > { %s1780_s21 = scalar_lea.vmem %s1779_s11, 16384  ;;  %p1781_p2 = scmp.lt.s32.totalorder %s1978_s22, %s1779_s11 }
  0x35   : > { %p1776_p6 = pnand %p1774_p1, %p1762_p7  ;;  %p1782_p3 = scmp.lt.s32.totalorder %s1780_s21, %s1773_s7 }
  0x37   : > { %p1777_p5 = pneg %p1776_p6  ;;  %p1783_p4 = por %p1782_p3, %p1781_p2 }
  0x39   : > { %p1784_p8 = pnand %p1783_p4, %p1777_p5 }
  0x3b   : > { %1787 = shalt.err (!%p1784_p8)
}
  0x3c   : > { %1688 = dma.hbm_to_vmem [thread:$0]  (!%p1974_p11), %s1972_s17, 8192, %s1978_s22, %s1980_s25, %s1859_s28, %s1859_s28, %s1860_s29  }
  0x3d   : > { %p2254_p1 = scmp.ne.s32.totalorder %s2249_s20, 0 }
  0x3e   : > { %s2007_s26 = sand.u32 (!%p2254_p1), 1, %s1848_s13   ;;  %p2255_p4 = scmp.ne.s32.totalorder (!%p2254_p1), %s2247_s18, 0 }
  0x3f   : > { %171 = sbr.rel (%p2254_p1) target bundleno = 379 (0x17b), region = 32  ;;  %s1103_s27 = sshll.u32 (!%p2254_p1), %s2007_s26, 9 }
  0x40   : > { %s174_s30 = scalar_lea.sflag (!%p2254_p1), [#allocation3], %s2007_s26  ;;  %s2011_s4 = scalar_lea.vmem (!%p2254_p1), [#allocation2], %s1103_s27 }
  0x44   : > { %1831 = dma.done.wait (%p2255_p4), %s174_s30, 8192  }
  0x45   : > { %1833 = vsyncadd (%p2255_p4), %s174_s30, 4294959104  ;;  %p2256_p6 = scmp.eq.s32.totalorder %s1906_s16, 0 }
  0x47   : > { %1835 = dma.done.wait (%p2256_p6), [#allocation6], 2048   ;;  %p2257_p8 = pmov %p2256_p6 }
  0x48   : > { %v285_v0 = vld [vmem:[#allocation5 + $0x78] sm:$0xff]  ;;  %v284_v1 = vld [vmem:[#allocation5 + $0x70] sm:$0xff]  ;;  %v283_v2 = vld [vmem:[#allocation5 + $0x68] sm:$0xff]  ;;  %s1105_s28 = sshll.u32 %s2007_s26, 8  ;;  %s1241_s17 = sshll.u32 %s1906_s16, 12 }
  0x49   : > { %1837 = vsyncadd (%p2257_p8), [#allocation6], 4294965248  ;;  %1513 = vmatprep.subr.mxu0 %v285_v0  ;;  %1641 = vmatprep.subr.mxu1 %v285_v0  ;;  %v282_v3 = vld [vmem:[#allocation5 + $0x60] sm:$0xff]  ;;  %v281_v4 = vld [vmem:[#allocation5 + $0x58] sm:$0xff]  ;;  %s2095_s29 = scalar_lea.vmem [#allocation7], %s1105_s28  ;;  %s2192_s8 = scalar_lea.hbm %s2242_s3, %s1241_s17 }
  0x4a   : > { %1514 = vmatpush3.msra.mxu0 %v285_v0  ;;  %1657 = vmatpush3.msra.mxu1 %v285_v0  ;;  %v280_v5 = vld [vmem:[#allocation5 + $0x50] sm:$0xff]  ;;  %v279_v6 = vld [vmem:[#allocation5 + $0x48] sm:$0xff]  ;;  %v278_v7 = vld [vmem:[#allocation5 + $0x40] sm:$0xff]  ;;  %s1012_s22 = sshll.u32 %s2095_s29, 4  ;;  %s999_s16 = scalar_lea.sflag [#allocation4], %s2007_s26  ;;  %s2194_s22 = int_to_ptr.vmem [resolvable:$true] %s1012_s22 }
  0x4b   : > { %1515 = vmatprep.subr.mxu0 %v284_v1  ;;  %1642 = vmatprep.subr.mxu1 %v284_v1  ;;  %v277_v8 = vld [vmem:[#allocation5 + $0x38] sm:$0xff]  ;;  %v276_v9 = vld [vmem:[#allocation5 + $0x30] sm:$0xff]  ;;  %v275_v10 = vld [vmem:[#allocation5 + $0x28] sm:$0xff]  ;;  %s1788_s9 = scalar_lea.vmem %s2194_s22, 4096  ;;  %p2258_p11 = scmp.ne.s32.totalorder %s2252_s6, 0 }
  0x4c   : > { %1516 = vmatpush3.msra.mxu0 %v284_v1  ;;  %1658 = vmatpush3.msra.mxu1 %v284_v1  ;;  %v274_v11 = vld [vmem:[#allocation5 + $0x20] sm:$0xff]  ;;  %v273_v12 = vld [vmem:[#allocation5 + $0x18] sm:$0xff]  ;;  %v272_v13 = vld [vmem:[#allocation5 + $0x10] sm:$0xff]  ;;  %p1789_p3 = scmp.ne.s32.totalorder %s2194_s22, %s1788_s9  ;;  %s1862_s7 = smov [#allocation7]  }
  0x4d   : > { %1517 = vmatprep.subr.mxu0 %v283_v2  ;;  %1643 = vmatprep.subr.mxu1 %v283_v2  ;;  %v271_v14 = vld [vmem:[#allocation5 + $0x8] sm:$0xff]  ;;  %v270_v15 = vld [vmem:[#allocation5] sm:$0xff]  ;;  %v208_v20 = vld [vmem:[%s2011_s4 + $0x10] sm:$0xff]  ;;  %s1792_s10 = sshll.u32 %s1862_s7, 4  ;;  %s1793_s10 = int_to_ptr.vmem [resolvable:$false] %s1792_s10 }
  0x4e   : > { %1518 = vmatpush3.msra.mxu0 %v283_v2  ;;  %1659 = vmatpush3.msra.mxu1 %v283_v2  ;;  %v206_v16 = vld [vmem:[%s2011_s4] sm:$0xff]  ;;  %v207_v18 = vld [vmem:[%s2011_s4 + $0x8] sm:$0xff]  ;;  %v240_v21 = vld [vmem:[%s2011_s4 + $0x110] sm:$0xff]  ;;  %p1790_p7 = pnand %p1789_p3, %p2258_p11  ;;  %s1794_s11 = scalar_lea.vmem %s1793_s10, 8192 }
  0x4f   : > { %1519 = vmatprep.subr.mxu0 %v282_v3  ;;  %1644 = vmatprep.subr.mxu1 %v282_v3  ;;  %v238_v17 = vld [vmem:[%s2011_s4 + $0x100] sm:$0xff]  ;;  %v239_v19 = vld [vmem:[%s2011_s4 + $0x108] sm:$0xff]  ;;  %v209_v22 = vld [vmem:[%s2011_s4 + $0x18] sm:$0xff]  ;;  %p1795_p10 = scmp.lt.s32.totalorder %s2194_s22, %s1793_s10  ;;  %p1796_p12 = scmp.lt.s32.totalorder %s1794_s11, %s1788_s9 }
  0x50   : > { %1520 = vmatpush3.msra.mxu0 %v282_v3  ;;  %1660 = vmatpush3.msra.mxu1 %v282_v3  ;;  %v241_v23 = vld [vmem:[%s2011_s4 + $0x118] sm:$0xff]  ;;  %v210_v24 = vld [vmem:[%s2011_s4 + $0x20] sm:$0xff]  ;;  %v211_v26 = vld [vmem:[%s2011_s4 + $0x28] sm:$0xff]  ;;  %p1791_p9 = pneg %p1790_p7 }
  0x51   : > { %1521 = vmatprep.subr.mxu0 %v281_v4  ;;  %1645 = vmatprep.subr.mxu1 %v281_v4  ;;  %v242_v25 = vld [vmem:[%s2011_s4 + $0x120] sm:$0xff]  ;;  %v243_v27 = vld [vmem:[%s2011_s4 + $0x128] sm:$0xff]  ;;  %v212_v28 = vld [vmem:[%s2011_s4 + $0x30] sm:$0xff]  ;;  %p1797_p13 = por %p1796_p12, %p1795_p10 }
  0x52   : > { %1522 = vmatpush3.msra.mxu0 %v281_v4  ;;  %1661 = vmatpush3.msra.mxu1 %v281_v4  ;;  %v244_v29 = vld [vmem:[%s2011_s4 + $0x130] sm:$0xff]  ;;  %v213_v30 = vld [vmem:[%s2011_s4 + $0x38] sm:$0xff]  ;;  %v214_v32 = vld [vmem:[%s2011_s4 + $0x40] sm:$0xff] }
  0x53   : > { %1523 = vmatprep.subr.mxu0 %v280_v5  ;;  %1646 = vmatprep.subr.mxu1 %v280_v5  ;;  %v245_v31 = vld [vmem:[%s2011_s4 + $0x138] sm:$0xff]  ;;  %v246_v33 = vld [vmem:[%s2011_s4 + $0x140] sm:$0xff]  ;;  %v215_v34 = vld [vmem:[%s2011_s4 + $0x48] sm:$0xff]  ;;  %p1798_p0 = pnand %p1797_p13, %p1791_p9 }
  0x54   : > { %1524 = vmatpush3.msra.mxu0 %v280_v5  ;;  %1662 = vmatpush3.msra.mxu1 %v280_v5  ;;  %v247_v35 = vld [vmem:[%s2011_s4 + $0x148] sm:$0xff]  ;;  %v216_v36 = vld [vmem:[%s2011_s4 + $0x50] sm:$0xff]  ;;  %v217_v38 = vld [vmem:[%s2011_s4 + $0x58] sm:$0xff] }
  0x55   : > { %1525 = vmatprep.subr.mxu0 %v279_v6  ;;  %1647 = vmatprep.subr.mxu1 %v279_v6  ;;  %v248_v37 = vld [vmem:[%s2011_s4 + $0x150] sm:$0xff]  ;;  %v249_v39 = vld [vmem:[%s2011_s4 + $0x158] sm:$0xff]  ;;  %v218_v40 = vld [vmem:[%s2011_s4 + $0x60] sm:$0xff] }
  0x56   : > { %1526 = vmatpush3.msra.mxu0 %v279_v6  ;;  %1663 = vmatpush3.msra.mxu1 %v279_v6  ;;  %v250_v41 = vld [vmem:[%s2011_s4 + $0x160] sm:$0xff]  ;;  %v219_v42 = vld [vmem:[%s2011_s4 + $0x68] sm:$0xff]  ;;  %v220_v44 = vld [vmem:[%s2011_s4 + $0x70] sm:$0xff] }
  0x57   : > { %1527 = vmatprep.subr.mxu0 %v278_v7  ;;  %1648 = vmatprep.subr.mxu1 %v278_v7  ;;  %v251_v43 = vld [vmem:[%s2011_s4 + $0x168] sm:$0xff]  ;;  %v252_v45 = vld [vmem:[%s2011_s4 + $0x170] sm:$0xff]  ;;  %v221_v46 = vld [vmem:[%s2011_s4 + $0x78] sm:$0xff] }
  0x58   : > { %1528 = vmatpush3.msra.mxu0 %v278_v7  ;;  %1664 = vmatpush3.msra.mxu1 %v278_v7  ;;  %v253_v47 = vld [vmem:[%s2011_s4 + $0x178] sm:$0xff]  ;;  %v222_v48 = vld [vmem:[%s2011_s4 + $0x80] sm:$0xff]  ;;  %v223_v50 = vld [vmem:[%s2011_s4 + $0x88] sm:$0xff] }
  0x59   : > { %1529 = vmatprep.subr.mxu0 %v277_v8  ;;  %1649 = vmatprep.subr.mxu1 %v277_v8  ;;  %v254_v49 = vld [vmem:[%s2011_s4 + $0x180] sm:$0xff]  ;;  %v255_v51 = vld [vmem:[%s2011_s4 + $0x188] sm:$0xff]  ;;  %v224_v52 = vld [vmem:[%s2011_s4 + $0x90] sm:$0xff] }
  0x5a   : > { %1530 = vmatpush3.msra.mxu0 %v277_v8  ;;  %1665 = vmatpush3.msra.mxu1 %v277_v8  ;;  %v256_v53 = vld [vmem:[%s2011_s4 + $0x190] sm:$0xff]  ;;  %v225_v54 = vld [vmem:[%s2011_s4 + $0x98] sm:$0xff]  ;;  %v226_v56 = vld [vmem:[%s2011_s4 + $0xa0] sm:$0xff] }
  0x5b   : > { %1531 = vmatprep.subr.mxu0 %v276_v9  ;;  %1650 = vmatprep.subr.mxu1 %v276_v9  ;;  %v257_v55 = vld [vmem:[%s2011_s4 + $0x198] sm:$0xff]  ;;  %v258_v57 = vld [vmem:[%s2011_s4 + $0x1a0] sm:$0xff]  ;;  %v227_v58 = vld [vmem:[%s2011_s4 + $0xa8] sm:$0xff] }
  0x5c   : > { %1532 = vmatpush3.msra.mxu0 %v276_v9  ;;  %1666 = vmatpush3.msra.mxu1 %v276_v9  ;;  %v259_v59 = vld [vmem:[%s2011_s4 + $0x1a8] sm:$0xff]  ;;  %v228_v60 = vld [vmem:[%s2011_s4 + $0xb0] sm:$0xff]  ;;  %v229_v62 = vld [vmem:[%s2011_s4 + $0xb8] sm:$0xff] }
  0x5d   : > { %1533 = vmatprep.subr.mxu0 %v275_v10  ;;  %1651 = vmatprep.subr.mxu1 %v275_v10  ;;  %v260_v61 = vld [vmem:[%s2011_s4 + $0x1b0] sm:$0xff]  ;;  %v261_v63 = vld [vmem:[%s2011_s4 + $0x1b8] sm:$0xff]  ;;  %v230_v0 = vld [vmem:[%s2011_s4 + $0xc0] sm:$0xff] }
  0x5e   : > { %1534 = vmatpush3.msra.mxu0 %v275_v10  ;;  %1667 = vmatpush3.msra.mxu1 %v275_v10  ;;  %v262_v1 = vld [vmem:[%s2011_s4 + $0x1c0] sm:$0xff]  ;;  %v231_v2 = vld [vmem:[%s2011_s4 + $0xc8] sm:$0xff]  ;;  %v232_v4 = vld [vmem:[%s2011_s4 + $0xd0] sm:$0xff] }
  0x5f   : > { %1535 = vmatprep.subr.mxu0 %v274_v11  ;;  %1652 = vmatprep.subr.mxu1 %v274_v11  ;;  %v263_v3 = vld [vmem:[%s2011_s4 + $0x1c8] sm:$0xff]  ;;  %v264_v5 = vld [vmem:[%s2011_s4 + $0x1d0] sm:$0xff]  ;;  %v233_v6 = vld [vmem:[%s2011_s4 + $0xd8] sm:$0xff] }
  0x60   : > { %1536 = vmatpush3.msra.mxu0 %v274_v11  ;;  %1668 = vmatpush3.msra.mxu1 %v274_v11  ;;  %v265_v7 = vld [vmem:[%s2011_s4 + $0x1d8] sm:$0xff]  ;;  %v234_v8 = vld [vmem:[%s2011_s4 + $0xe0] sm:$0xff]  ;;  %v235_v10 = vld [vmem:[%s2011_s4 + $0xe8] sm:$0xff] }
  0x61   : > { %1537 = vmatprep.subr.mxu0 %v273_v12  ;;  %1653 = vmatprep.subr.mxu1 %v273_v12  ;;  %v266_v9 = vld [vmem:[%s2011_s4 + $0x1e0] sm:$0xff]  ;;  %v267_v11 = vld [vmem:[%s2011_s4 + $0x1e8] sm:$0xff] }
  0x62   : > { %1538 = vmatpush3.msra.mxu0 %v273_v12  ;;  %1669 = vmatpush3.msra.mxu1 %v273_v12  ;;  %v236_v12 = vld [vmem:[%s2011_s4 + $0xf0] sm:$0xff] }
  0x63   : > { %1539 = vmatprep.subr.mxu0 %v272_v13  ;;  %1654 = vmatprep.subr.mxu1 %v272_v13 }
  0x64   : > { %1540 = vmatpush3.msra.mxu0 %v272_v13  ;;  %1670 = vmatpush3.msra.mxu1 %v272_v13  ;;  %v268_v13 = vld [vmem:[%s2011_s4 + $0x1f0] sm:$0xff] }
  0x65   : > { %1541 = vmatprep.subr.mxu0 %v271_v14  ;;  %1655 = vmatprep.subr.mxu1 %v271_v14 }
  0x66   : > { %1542 = vmatpush3.msra.mxu0 %v271_v14  ;;  %1671 = vmatpush3.msra.mxu1 %v271_v14  ;;  %v237_v14 = vld [vmem:[%s2011_s4 + $0xf8] sm:$0xff] }
  0x67   : > { %1543 = vmatprep.subr.mxu0 %v270_v15  ;;  %1656 = vmatprep.subr.mxu1 %v270_v15 }
  0x68   : > { %1544 = vmatpush3.msra.mxu0 %v270_v15  ;;  %1672 = vmatpush3.msra.mxu1 %v270_v15  ;;  %v269_v15 = vld [vmem:[%s2011_s4 + $0x1f8] sm:$0xff] }
  0x69   : > { %1545 = vmatprep.mubr.f32.mxu0 %v206_v16  ;;  %1593 = vmatprep.mubr.f32.mxu1 %v238_v17  ;;  %v2088_v17 = vld [vmem:[%s2241_s2] ss:$0 sm:$0xff] }
  0x6a   : > { %1546 = vmatmul.mubr.f32.vlgmr.msra.gmra.mxu0 %v207_v18  ;;  %1594 = vmatmul.mubr.f32.vlgmr.msra.gmra.mxu1 %v239_v19 }
  0x6b   : > { %1548 = vmatprep.mubr.f32.mxu0 %v208_v20  ;;  %1596 = vmatprep.mubr.f32.mxu1 %v240_v21 }
  0x6e   : > { %1549 = vmatmul.mubr.f32.gmra.mxu0 %v209_v22  ;;  %1597 = vmatmul.mubr.f32.gmra.mxu1 %v241_v23 }
  0x6f   : > { %1551 = vmatprep.mubr.f32.mxu0 %v210_v24  ;;  %1599 = vmatprep.mubr.f32.mxu1 %v242_v25 }
  0x72   : > { %1552 = vmatmul.mubr.f32.gmra.mxu0 %v211_v26  ;;  %1600 = vmatmul.mubr.f32.gmra.mxu1 %v243_v27 }
  0x73   : > { %1554 = vmatprep.mubr.f32.mxu0 %v212_v28  ;;  %1602 = vmatprep.mubr.f32.mxu1 %v244_v29 }
  0x76   : > { %1555 = vmatmul.mubr.f32.gmra.mxu0 %v213_v30  ;;  %1603 = vmatmul.mubr.f32.gmra.mxu1 %v245_v31 }
  0x77   : > { %1557 = vmatprep.mubr.f32.mxu0 %v214_v32  ;;  %1605 = vmatprep.mubr.f32.mxu1 %v246_v33 }
  0x7a   : > { %1558 = vmatmul.mubr.f32.gmra.mxu0 %v215_v34  ;;  %1606 = vmatmul.mubr.f32.gmra.mxu1 %v247_v35 }
  0x7b   : > { %1560 = vmatprep.mubr.f32.mxu0 %v216_v36  ;;  %1608 = vmatprep.mubr.f32.mxu1 %v248_v37 }
  0x7e   : > { %1561 = vmatmul.mubr.f32.gmra.mxu0 %v217_v38  ;;  %1609 = vmatmul.mubr.f32.gmra.mxu1 %v249_v39 }
  0x7f   : > { %1563 = vmatprep.mubr.f32.mxu0 %v218_v40  ;;  %1611 = vmatprep.mubr.f32.mxu1 %v250_v41 }
  0x82   : > { %1564 = vmatmul.mubr.f32.gmra.mxu0 %v219_v42  ;;  %1612 = vmatmul.mubr.f32.gmra.mxu1 %v251_v43 }
  0x83   : > { %1566 = vmatprep.mubr.f32.mxu0 %v220_v44  ;;  %1614 = vmatprep.mubr.f32.mxu1 %v252_v45 }
  0x86   : > { %1567 = vmatmul.mubr.f32.gmra.mxu0 %v221_v46  ;;  %1615 = vmatmul.mubr.f32.gmra.mxu1 %v253_v47 }
  0x87   : > { %1569 = vmatprep.mubr.f32.mxu0 %v222_v48  ;;  %1617 = vmatprep.mubr.f32.mxu1 %v254_v49 }
  0x8a   : > { %1570 = vmatmul.mubr.f32.gmra.mxu0 %v223_v50  ;;  %1618 = vmatmul.mubr.f32.gmra.mxu1 %v255_v51 }
  0x8b   : > { %1572 = vmatprep.mubr.f32.mxu0 %v224_v52  ;;  %1620 = vmatprep.mubr.f32.mxu1 %v256_v53 }
  0x8e   : > { %1573 = vmatmul.mubr.f32.gmra.mxu0 %v225_v54  ;;  %1621 = vmatmul.mubr.f32.gmra.mxu1 %v257_v55 }
  0x8f   : > { %1575 = vmatprep.mubr.f32.mxu0 %v226_v56  ;;  %1623 = vmatprep.mubr.f32.mxu1 %v258_v57 }
  0x92   : > { %1576 = vmatmul.mubr.f32.gmra.mxu0 %v227_v58  ;;  %1624 = vmatmul.mubr.f32.gmra.mxu1 %v259_v59 }
  0x93   : > { %1578 = vmatprep.mubr.f32.mxu0 %v228_v60  ;;  %1626 = vmatprep.mubr.f32.mxu1 %v260_v61 }
  0x96   : > { %1579 = vmatmul.mubr.f32.gmra.mxu0 %v229_v62  ;;  %1627 = vmatmul.mubr.f32.gmra.mxu1 %v261_v63 }
  0x97   : > { %1581 = vmatprep.mubr.f32.mxu0 %v230_v0  ;;  %1629 = vmatprep.mubr.f32.mxu1 %v262_v1 }
  0x9a   : > { %1582 = vmatmul.mubr.f32.gmra.mxu0 %v231_v2  ;;  %1630 = vmatmul.mubr.f32.gmra.mxu1 %v263_v3 }
  0x9b   : > { %1584 = vmatprep.mubr.f32.mxu0 %v232_v4  ;;  %1632 = vmatprep.mubr.f32.mxu1 %v264_v5 }
  0x9e   : > { %1585 = vmatmul.mubr.f32.gmra.mxu0 %v233_v6  ;;  %1633 = vmatmul.mubr.f32.gmra.mxu1 %v265_v7 }
  0x9f   : > { %1587 = vmatprep.mubr.f32.mxu0 %v234_v8  ;;  %1635 = vmatprep.mubr.f32.mxu1 %v266_v9 }
  0xa2   : > { %1588 = vmatmul.mubr.f32.gmra.mxu0 %v235_v10  ;;  %1636 = vmatmul.mubr.f32.gmra.mxu1 %v267_v11 }
  0xa3   : > { %1590 = vmatprep.mubr.f32.mxu0 %v236_v12  ;;  %1638 = vmatprep.mubr.f32.mxu1 %v268_v13 }
  0xa6   : > { %1591 = vmatmul.mubr.f32.gmra.mxu0 %v237_v14  ;;  %1639 = vmatmul.mubr.f32.gmra.mxu1 %v269_v15 }
 0x12a   : > { %v1547_v16 = vpop.f32.mrf.mxu0  ;;  %v1595_v18 = vpop.f32.mrf.mxu1 }
 0x12b   : > { %v365_v21 = vadd.f32 %v1547_v16, %v2088_v17  ;;  %v525_v22 = vadd.f32 %v1595_v18, %v2088_v17 }
 0x12c   : > { %v359_v19 = vpop.f32.mrf.mxu0  ;;  %v519_v20 = vpop.f32.mrf.mxu1 }
 0x12d   : > { %v360_v23 = vadd.f32 %v2088_v17, %v359_v19  ;;  %v520_v24 = vadd.f32 %v2088_v17, %v519_v20 }
 0x12e   : > { %v1550_v25 = vpop.f32.mrf.mxu0  ;;  %v1598_v26 = vpop.f32.mrf.mxu1 }
 0x12f   : > { %v1245_v27 = vpack.c.bf16 %v365_v21, %v360_v23  ;;  %v1325_v28 = vpack.c.bf16 %v525_v22, %v520_v24  ;;  %v375_v31 = vadd.f32 %v1550_v25, %v2088_v17  ;;  %v535_v32 = vadd.f32 %v1598_v26, %v2088_v17 }
 0x130   : > { %v369_v29 = vpop.f32.mrf.mxu0  ;;  %v529_v30 = vpop.f32.mrf.mxu1 }
 0x131   : > { %1246 = vst [vmem:[%s2095_s29] sm:$0xff] %v1245_v27   ;;  %1417 = vst [vmem:[%s2095_s29 + $0x80] sm:$0xff] %v1325_v28   ;;  %v370_v33 = vadd.f32 %v2088_v17, %v369_v29  ;;  %v530_v34 = vadd.f32 %v2088_v17, %v529_v30 }
 0x132   : > { %v1553_v35 = vpop.f32.mrf.mxu0  ;;  %v1601_v36 = vpop.f32.mrf.mxu1 }
 0x133   : > { %v1250_v37 = vpack.c.bf16 %v375_v31, %v370_v33  ;;  %v1330_v38 = vpack.c.bf16 %v535_v32, %v530_v34  ;;  %v385_v41 = vadd.f32 %v1553_v35, %v2088_v17  ;;  %v545_v42 = vadd.f32 %v1601_v36, %v2088_v17 }
 0x134   : > { %v379_v39 = vpop.f32.mrf.mxu0  ;;  %v539_v40 = vpop.f32.mrf.mxu1 }
 0x135   : > { %1402 = vst [vmem:[%s2095_s29 + $0x8] sm:$0xff] %v1250_v37   ;;  %1418 = vst [vmem:[%s2095_s29 + $0x88] sm:$0xff] %v1330_v38   ;;  %v380_v43 = vadd.f32 %v2088_v17, %v379_v39  ;;  %v540_v44 = vadd.f32 %v2088_v17, %v539_v40 }
 0x136   : > { %v1556_v45 = vpop.f32.mrf.mxu0  ;;  %v1604_v46 = vpop.f32.mrf.mxu1 }
 0x137   : > { %v1255_v47 = vpack.c.bf16 %v385_v41, %v380_v43  ;;  %v1335_v48 = vpack.c.bf16 %v545_v42, %v540_v44  ;;  %v395_v51 = vadd.f32 %v1556_v45, %v2088_v17  ;;  %v555_v52 = vadd.f32 %v1604_v46, %v2088_v17 }
 0x138   : > { %v389_v49 = vpop.f32.mrf.mxu0  ;;  %v549_v50 = vpop.f32.mrf.mxu1 }
 0x139   : > { %1403 = vst [vmem:[%s2095_s29 + $0x10] sm:$0xff] %v1255_v47   ;;  %1419 = vst [vmem:[%s2095_s29 + $0x90] sm:$0xff] %v1335_v48   ;;  %v390_v53 = vadd.f32 %v2088_v17, %v389_v49  ;;  %v550_v54 = vadd.f32 %v2088_v17, %v549_v50 }
 0x13a   : > { %v1559_v55 = vpop.f32.mrf.mxu0  ;;  %v1607_v56 = vpop.f32.mrf.mxu1 }
 0x13b   : > { %v1260_v57 = vpack.c.bf16 %v395_v51, %v390_v53  ;;  %v1340_v58 = vpack.c.bf16 %v555_v52, %v550_v54  ;;  %v405_v61 = vadd.f32 %v1559_v55, %v2088_v17  ;;  %v565_v62 = vadd.f32 %v1607_v56, %v2088_v17 }
 0x13c   : > { %v399_v59 = vpop.f32.mrf.mxu0  ;;  %v559_v60 = vpop.f32.mrf.mxu1 }
 0x13d   : > { %1404 = vst [vmem:[%s2095_s29 + $0x18] sm:$0xff] %v1260_v57   ;;  %1420 = vst [vmem:[%s2095_s29 + $0x98] sm:$0xff] %v1340_v58   ;;  %v400_v63 = vadd.f32 %v2088_v17, %v399_v59  ;;  %v560_v0 = vadd.f32 %v2088_v17, %v559_v60 }
 0x13e   : > { %v1562_v1 = vpop.f32.mrf.mxu0  ;;  %v1610_v2 = vpop.f32.mrf.mxu1 }
 0x13f   : > { %v1265_v3 = vpack.c.bf16 %v405_v61, %v400_v63  ;;  %v1345_v4 = vpack.c.bf16 %v565_v62, %v560_v0  ;;  %v415_v7 = vadd.f32 %v1562_v1, %v2088_v17  ;;  %v575_v8 = vadd.f32 %v1610_v2, %v2088_v17 }
 0x140   : > { %v409_v5 = vpop.f32.mrf.mxu0  ;;  %v569_v6 = vpop.f32.mrf.mxu1 }
 0x141   : > { %1405 = vst [vmem:[%s2095_s29 + $0x20] sm:$0xff] %v1265_v3   ;;  %1421 = vst [vmem:[%s2095_s29 + $0xa0] sm:$0xff] %v1345_v4   ;;  %v410_v9 = vadd.f32 %v2088_v17, %v409_v5  ;;  %v570_v10 = vadd.f32 %v2088_v17, %v569_v6 }
 0x142   : > { %v1565_v11 = vpop.f32.mrf.mxu0  ;;  %v1613_v12 = vpop.f32.mrf.mxu1 }
 0x143   : > { %v1270_v13 = vpack.c.bf16 %v415_v7, %v410_v9  ;;  %v1350_v14 = vpack.c.bf16 %v575_v8, %v570_v10  ;;  %v425_v18 = vadd.f32 %v1565_v11, %v2088_v17  ;;  %v585_v19 = vadd.f32 %v1613_v12, %v2088_v17 }
 0x144   : > { %v419_v15 = vpop.f32.mrf.mxu0  ;;  %v579_v16 = vpop.f32.mrf.mxu1 }
 0x145   : > { %1406 = vst [vmem:[%s2095_s29 + $0x28] sm:$0xff] %v1270_v13   ;;  %1422 = vst [vmem:[%s2095_s29 + $0xa8] sm:$0xff] %v1350_v14   ;;  %v420_v20 = vadd.f32 %v2088_v17, %v419_v15  ;;  %v580_v21 = vadd.f32 %v2088_v17, %v579_v16 }
 0x146   : > { %v1568_v22 = vpop.f32.mrf.mxu0  ;;  %v1616_v23 = vpop.f32.mrf.mxu1 }
 0x147   : > { %v1275_v24 = vpack.c.bf16 %v425_v18, %v420_v20  ;;  %v1355_v25 = vpack.c.bf16 %v585_v19, %v580_v21  ;;  %v435_v28 = vadd.f32 %v1568_v22, %v2088_v17  ;;  %v595_v29 = vadd.f32 %v1616_v23, %v2088_v17 }
 0x148   : > { %v429_v26 = vpop.f32.mrf.mxu0  ;;  %v589_v27 = vpop.f32.mrf.mxu1 }
 0x149   : > { %1407 = vst [vmem:[%s2095_s29 + $0x30] sm:$0xff] %v1275_v24   ;;  %1423 = vst [vmem:[%s2095_s29 + $0xb0] sm:$0xff] %v1355_v25   ;;  %v430_v30 = vadd.f32 %v2088_v17, %v429_v26  ;;  %v590_v31 = vadd.f32 %v2088_v17, %v589_v27 }
 0x14a   : > { %v1571_v32 = vpop.f32.mrf.mxu0  ;;  %v1619_v33 = vpop.f32.mrf.mxu1 }
 0x14b   : > { %v1280_v34 = vpack.c.bf16 %v435_v28, %v430_v30  ;;  %v1360_v35 = vpack.c.bf16 %v595_v29, %v590_v31  ;;  %v445_v38 = vadd.f32 %v1571_v32, %v2088_v17  ;;  %v605_v39 = vadd.f32 %v1619_v33, %v2088_v17 }
 0x14c   : > { %v439_v36 = vpop.f32.mrf.mxu0  ;;  %v599_v37 = vpop.f32.mrf.mxu1 }
 0x14d   : > { %1408 = vst [vmem:[%s2095_s29 + $0x38] sm:$0xff] %v1280_v34   ;;  %1424 = vst [vmem:[%s2095_s29 + $0xb8] sm:$0xff] %v1360_v35   ;;  %v440_v40 = vadd.f32 %v2088_v17, %v439_v36  ;;  %v600_v41 = vadd.f32 %v2088_v17, %v599_v37 }
 0x14e   : > { %v1574_v42 = vpop.f32.mrf.mxu0  ;;  %v1622_v43 = vpop.f32.mrf.mxu1 }
 0x14f   : > { %v1285_v44 = vpack.c.bf16 %v445_v38, %v440_v40  ;;  %v1365_v45 = vpack.c.bf16 %v605_v39, %v600_v41  ;;  %v455_v48 = vadd.f32 %v1574_v42, %v2088_v17  ;;  %v615_v49 = vadd.f32 %v1622_v43, %v2088_v17 }
 0x150   : > { %v449_v46 = vpop.f32.mrf.mxu0  ;;  %v609_v47 = vpop.f32.mrf.mxu1 }
 0x151   : > { %1409 = vst [vmem:[%s2095_s29 + $0x40] sm:$0xff] %v1285_v44   ;;  %1425 = vst [vmem:[%s2095_s29 + $0xc0] sm:$0xff] %v1365_v45   ;;  %v450_v50 = vadd.f32 %v2088_v17, %v449_v46  ;;  %v610_v51 = vadd.f32 %v2088_v17, %v609_v47 }
 0x152   : > { %v1577_v52 = vpop.f32.mrf.mxu0  ;;  %v1625_v53 = vpop.f32.mrf.mxu1 }
 0x153   : > { %v1290_v54 = vpack.c.bf16 %v455_v48, %v450_v50  ;;  %v1370_v55 = vpack.c.bf16 %v615_v49, %v610_v51  ;;  %v465_v58 = vadd.f32 %v1577_v52, %v2088_v17  ;;  %v625_v59 = vadd.f32 %v1625_v53, %v2088_v17 }
 0x154   : > { %v459_v56 = vpop.f32.mrf.mxu0  ;;  %v619_v57 = vpop.f32.mrf.mxu1 }
 0x155   : > { %1410 = vst [vmem:[%s2095_s29 + $0x48] sm:$0xff] %v1290_v54   ;;  %1426 = vst [vmem:[%s2095_s29 + $0xc8] sm:$0xff] %v1370_v55   ;;  %v460_v60 = vadd.f32 %v2088_v17, %v459_v56  ;;  %v620_v61 = vadd.f32 %v2088_v17, %v619_v57 }
 0x156   : > { %v1580_v62 = vpop.f32.mrf.mxu0  ;;  %v1628_v63 = vpop.f32.mrf.mxu1 }
 0x157   : > { %v1295_v0 = vpack.c.bf16 %v465_v58, %v460_v60  ;;  %v1375_v1 = vpack.c.bf16 %v625_v59, %v620_v61  ;;  %v475_v4 = vadd.f32 %v1580_v62, %v2088_v17  ;;  %v635_v5 = vadd.f32 %v1628_v63, %v2088_v17 }
 0x158   : > { %v469_v2 = vpop.f32.mrf.mxu0  ;;  %v629_v3 = vpop.f32.mrf.mxu1 }
 0x159   : > { %1411 = vst [vmem:[%s2095_s29 + $0x50] sm:$0xff] %v1295_v0   ;;  %1427 = vst [vmem:[%s2095_s29 + $0xd0] sm:$0xff] %v1375_v1   ;;  %v470_v6 = vadd.f32 %v2088_v17, %v469_v2  ;;  %v630_v7 = vadd.f32 %v2088_v17, %v629_v3 }
 0x15a   : > { %v1583_v8 = vpop.f32.mrf.mxu0  ;;  %v1631_v9 = vpop.f32.mrf.mxu1 }
 0x15b   : > { %v1300_v10 = vpack.c.bf16 %v475_v4, %v470_v6  ;;  %v1380_v11 = vpack.c.bf16 %v635_v5, %v630_v7  ;;  %v485_v14 = vadd.f32 %v1583_v8, %v2088_v17  ;;  %v645_v15 = vadd.f32 %v1631_v9, %v2088_v17 }
 0x15c   : > { %v479_v12 = vpop.f32.mrf.mxu0  ;;  %v639_v13 = vpop.f32.mrf.mxu1 }
 0x15d   : > { %1412 = vst [vmem:[%s2095_s29 + $0x58] sm:$0xff] %v1300_v10   ;;  %1428 = vst [vmem:[%s2095_s29 + $0xd8] sm:$0xff] %v1380_v11   ;;  %v480_v16 = vadd.f32 %v2088_v17, %v479_v12  ;;  %v640_v18 = vadd.f32 %v2088_v17, %v639_v13 }
 0x15e   : > { %v1586_v19 = vpop.f32.mrf.mxu0  ;;  %v1634_v20 = vpop.f32.mrf.mxu1 }
 0x15f   : > { %v1305_v21 = vpack.c.bf16 %v485_v14, %v480_v16  ;;  %v1385_v22 = vpack.c.bf16 %v645_v15, %v640_v18  ;;  %v495_v25 = vadd.f32 %v1586_v19, %v2088_v17  ;;  %v655_v26 = vadd.f32 %v1634_v20, %v2088_v17 }
 0x160   : > { %v489_v23 = vpop.f32.mrf.mxu0  ;;  %v649_v24 = vpop.f32.mrf.mxu1 }
 0x161   : > { %1413 = vst [vmem:[%s2095_s29 + $0x60] sm:$0xff] %v1305_v21   ;;  %1429 = vst [vmem:[%s2095_s29 + $0xe0] sm:$0xff] %v1385_v22   ;;  %v490_v27 = vadd.f32 %v2088_v17, %v489_v23  ;;  %v650_v28 = vadd.f32 %v2088_v17, %v649_v24 }
 0x162   : > { %v1589_v29 = vpop.f32.mrf.mxu0  ;;  %v1637_v30 = vpop.f32.mrf.mxu1 }
 0x163   : > { %v1310_v31 = vpack.c.bf16 %v495_v25, %v490_v27  ;;  %v1390_v32 = vpack.c.bf16 %v655_v26, %v650_v28  ;;  %v505_v35 = vadd.f32 %v1589_v29, %v2088_v17  ;;  %v665_v36 = vadd.f32 %v1637_v30, %v2088_v17 }
 0x164   : > { %v499_v33 = vpop.f32.mrf.mxu0  ;;  %v659_v34 = vpop.f32.mrf.mxu1 }
 0x165   : > { %1414 = vst [vmem:[%s2095_s29 + $0x68] sm:$0xff] %v1310_v31   ;;  %1430 = vst [vmem:[%s2095_s29 + $0xe8] sm:$0xff] %v1390_v32   ;;  %v500_v37 = vadd.f32 %v2088_v17, %v499_v33  ;;  %v660_v38 = vadd.f32 %v2088_v17, %v659_v34 }
 0x166   : > { %v1592_v39 = vpop.f32.mrf.mxu0  ;;  %v1640_v40 = vpop.f32.mrf.mxu1 }
 0x167   : > { %v1315_v41 = vpack.c.bf16 %v505_v35, %v500_v37  ;;  %v1395_v42 = vpack.c.bf16 %v665_v36, %v660_v38  ;;  %v515_v45 = vadd.f32 %v1592_v39, %v2088_v17  ;;  %v675_v46 = vadd.f32 %v1640_v40, %v2088_v17 }
 0x168   : > { %v509_v43 = vpop.f32.mrf.mxu0  ;;  %v669_v44 = vpop.f32.mrf.mxu1 }
 0x169   : > { %1415 = vst [vmem:[%s2095_s29 + $0x70] sm:$0xff] %v1315_v41   ;;  %1431 = vst [vmem:[%s2095_s29 + $0xf0] sm:$0xff] %v1395_v42   ;;  %v510_v47 = vadd.f32 %v2088_v17, %v509_v43  ;;  %v670_v48 = vadd.f32 %v2088_v17, %v669_v44 }
 0x16b   : > { %v1320_v49 = vpack.c.bf16 %v515_v45, %v510_v47  ;;  %v1400_v50 = vpack.c.bf16 %v675_v46, %v670_v48 }
 0x16d   : > { %1416 = vst [vmem:[%s2095_s29 + $0x78] sm:$0xff] %v1320_v49   ;;  %1432 = vst [vmem:[%s2095_s29 + $0xf8] sm:$0xff] %v1400_v50  }
 0x16e   : > { %1801 = shalt.err (!%p1798_p0)
}
 0x16f   : > { %s1802_s21 = scalar_lea.hbm %s2192_s8, 4096  ;;  %s1806_s4 = scalar_lea.hbm %s2242_s3, 8192 }
 0x170   : > { %p1803_p5 = scmp.ne.s32.totalorder %s2192_s8, %s1802_s21  ;;  %p1807_p4 = scmp.lt.s32.totalorder %s2192_s8, %s2242_s3 }
 0x171   : > { %p1808_p6 = scmp.lt.s32.totalorder %s1806_s4, %s1802_s21 }
 0x172   : > { %p1804_p2 = pnand %p1803_p5, %p2258_p11 }
 0x173   : > { %p1809_p8 = por %p1808_p6, %p1807_p4 }
 0x174   : > { %p1805_p1 = pneg %p1804_p2 }
 0x176   : > { %p1810_p3 = pnand %p1809_p8, %p1805_p1 }
 0x178   : > { %1813 = shalt.err (!%p1810_p3)
}
 0x179   : > { %s1863_s28 = smov 64   ;;  %s1864_s29 = smov 4  }
 0x17a   : > { %1679 = dma.vmem_to_hbm [thread:$0]  (%p2258_p11), %s2194_s22, 4096, %s2192_s8, %s999_s16, %s1863_s28, %s1863_s28, %s1864_s29  }
 0x17b PF: > { %s1027_s17 = sand.u32 1, %s1844_s12   ;;  %p2259_p7 = scmp.ne.s32.totalorder %s2248_s19, 0 }
 0x17c   : > { %p2260_p9 = scmp.ge.s32.totalorder %s1856_s15, 2  ;;  %s1028_s23 = scalar_lea.sflag [#allocation4], %s1027_s17 }
 0x17e   : > { %p1690_p10 = pnand %p2260_p9, %p2259_p7 }
 0x180   : > { %p1691_p12 = pneg %p1690_p10 }
 0x182   : > { %1839 = dma.done.wait (%p1691_p12), %s1028_s23, 4096  }
 0x183   : > { %1841 = vsyncadd (%p1691_p12), %s1028_s23, 4294963200  ;;  %p17_p13 = scmp.ge.s32.totalorder %s1939_s24, 4   ;;  %s2261_s12 = smov %s1848_s13 }
 0x184   : > { %s2262_s13 = smov %s1852_s14  ;;  %s2263_s14 = smov %s1959_s5 }
 0x185   : > { %s2264_s15 = smov %s1939_s24  ;;  %19 = sbr.rel (!%p17_p13) target bundleno = 6 (0x6), region = 81 }
 0x18a   :  { %1033 = vsyncpa [#allocation3], 1 }
 0x18b   :  { %1035 = vsyncpa [#allocation3 + $0x1], 1 }
 0x18c   :  { %1036 = vsyncpa [#allocation6], 1 }
 0x18d   :  { %1037 = vsyncpa [#allocation4], 1 }
 0x18e   :  { %1039 = vsyncpa [#allocation4 + $0x1], 1 }

</bundles_post_ra>
